<compile_context>
chip_gen: v6e
topology: v6e:2x2x1
jax: 0.10.0
libtpu: 0.0.40
codegen_flags: <defaults>
</compile_context>

<pallas_src>
import functools

import jax
import jax.numpy as jnp
from jax.experimental import pallas as pl
from jax.experimental.pallas import tpu as pltpu

C_PAD = 128   # padded channel width -> lane-dense vregs / unmasked stores
BB_MAX = 8    # images fused per grid step


# ------------------------------ Pallas kernel ------------------------------ #

def fused_forward_kernel(patches_ref, pool_ref, w_stem_ref, b_stem_ref,
                         w_pw_ref, b_pw_ref, w_fc_ref, b_fc_ref,
                         o_ref, *, n_classes):
    """BB images per grid step: conv stack + pool + BN1d + FC + log_softmax."""
    x = patches_ref[...]                                        # (BB*HW, K_pad) bf16

    # stem 3x3/s2 conv (BN scale folded into weights) + hardswish
    y = jnp.dot(x, w_stem_ref[...], preferred_element_type=jnp.float32)
    y = y + b_stem_ref[...]
    y = y * jnp.clip(y + 3.0, 0.0, 6.0) * (1.0 / 6.0)           # f32 on the VPU

    # 1x1 pointwise conv (BN folded) + hardswish; bf16 only feeds the MXU
    y = jnp.dot(y.astype(jnp.bfloat16), w_pw_ref[...],
                preferred_element_type=jnp.float32)
    y = y + b_pw_ref[...]
    feat = y * jnp.clip(y + 3.0, 0.0, 6.0) * (1.0 / 6.0)        # (BB*HW, C_PAD) f32

    # global average pool (avgpool + squeeze) as one small matmul:
    # pool_ref[b, r] = 1/HW iff row r belongs to image b
    pooled = jnp.dot(pool_ref[...], feat,
                     preferred_element_type=jnp.float32)        # (BB, C_PAD)

    # BatchNorm1d(eval) is folded into w_fc/b_fc in the wrapper.
    # Dropout(p=0.5) is identity in eval mode.
    logits = jnp.dot(pooled, w_fc_ref[...],
                     preferred_element_type=jnp.float32) + b_fc_ref[...]

    # mask padded class lanes, then log_softmax over the 10 real classes
    lane = jax.lax.broadcasted_iota(jnp.int32, logits.shape, 1)
    logits = jnp.where(lane < n_classes, logits, -1e30)
    m = jnp.max(logits, axis=1, keepdims=True)
    s = logits - m
    lse = jnp.log(jnp.sum(jnp.exp(s), axis=1, keepdims=True))
    o_ref[...] = s - lse                                        # (BB, C_PAD)


# ------------------------------ pallas_call glue ---------------------------- #

def _call_fused(patches_flat, pool_mat, w_stem, b_stem, w_pw, b_pw, w_fc, b_fc,
                *, hw, bb, n_pad, n_classes):
    _, k_pad = patches_flat.shape
    kernel = functools.partial(fused_forward_kernel, n_classes=n_classes)
    out = pl.pallas_call(
        kernel,
        out_shape=jax.ShapeDtypeStruct((n_pad, C_PAD), jnp.float32),
        grid=(n_pad // bb,),
        in_specs=[
            pl.BlockSpec((bb * hw, k_pad), lambda i: (i, 0)),   # per image block
            pl.BlockSpec(pool_mat.shape, lambda i: (0, 0)),     # resident weights
            pl.BlockSpec(w_stem.shape, lambda i: (0, 0)),
            pl.BlockSpec(b_stem.shape, lambda i: (0, 0)),
            pl.BlockSpec(w_pw.shape, lambda i: (0, 0)),
            pl.BlockSpec(b_pw.shape, lambda i: (0, 0)),
            pl.BlockSpec(w_fc.shape, lambda i: (0, 0)),
            pl.BlockSpec(b_fc.shape, lambda i: (0, 0)),
        ],
        out_specs=pl.BlockSpec((bb, C_PAD), lambda i: (i, 0)),
        compiler_params=pltpu.CompilerParams(
            dimension_semantics=("parallel",)),   # batch split across TCs (v7x)
    )(patches_flat, pool_mat, w_stem, b_stem, w_pw, b_pw, w_fc, b_fc)
    return out


# --------------------------------- model ----------------------------------- #

def _im2col(x_nhwc, ksize, stride, pad):
    """Extract conv patches (plain-JAX glue; compute stays in the kernel)."""
    n, h, w, c = x_nhwc.shape
    xp = jnp.pad(x_nhwc, ((0, 0), (pad, pad), (pad, pad), (0, 0)))
    ho = (h + 2 * pad - ksize) // stride + 1
    wo = (w + 2 * pad - ksize) // stride + 1
    cols = []
    for i in range(ksize):
        for j in range(ksize):
            cols.append(xp[:, i:i + stride * ho:stride, j:j + stride * wo:stride, :])
    patches = jnp.concatenate(cols, axis=-1)               # (N, Ho, Wo, k*k*C)
    # NOTE: flattened tap order is (ki, kj, C_in); real PyTorch weights
    # (C_out, C_in, kh, kw) must be permuted accordingly before use.
    return patches.reshape(n, ho * wo, ksize * ksize * c), (n, ho, wo)


def _fold_bn(gamma, beta, mean, var, eps=1e-5):
    scale = gamma / jnp.sqrt(var + eps)
    bias = beta - mean * scale
    return scale, bias


def _pad2d(a, rows, cols):
    return jnp.pad(a, ((0, rows - a.shape[0]), (0, cols - a.shape[1])))


def _pool_matrix(bb, hw):
    """(bb, bb*hw) matrix averaging each image's hw rows."""
    eye = jnp.eye(bb, dtype=jnp.float32)
    return jnp.repeat(eye, hw, axis=1) * (1.0 / hw)


def init_params(key, c_in=3, c_stem=16, in_features=64, n_classes=10):
    ks = jax.random.split(key, 12)
    p = {}
    # stem conv 3x3/s2 (bias=False, as in mobilenet_v3) + BN
    p["w_stem"] = jax.random.normal(ks[0], (3 * 3 * c_in, c_stem), jnp.float32) * 0.1
    p["stem_bn"] = (jax.random.normal(ks[1], (c_stem,)) * 0.1 + 1.0,            # gamma
                    jax.random.normal(ks[2], (c_stem,)) * 0.1,                  # beta
                    jax.random.normal(ks[3], (c_stem,)) * 0.1,                  # running_mean
                    jnp.abs(jax.random.normal(ks[4], (c_stem,))) * 0.1 + 1.0)   # running_var
    # last 1x1 conv -> in_features, + BN
    p["w_pw"] = jax.random.normal(ks[5], (c_stem, in_features), jnp.float32) * 0.1
    p["pw_bn"] = (jax.random.normal(ks[6], (in_features,)) * 0.1 + 1.0,
                  jax.random.normal(ks[7], (in_features,)) * 0.1,
                  jax.random.normal(ks[8], (in_features,)) * 0.1,
                  jnp.abs(jax.random.normal(ks[9], (in_features,))) * 0.1 + 1.0)
    # BatchNorm1d(in_features): PyTorch init -> gamma=1, beta=0, mean=0, var=1
    p["head_bn"] = (jnp.ones((in_features,), jnp.float32),
                    jnp.zeros((in_features,), jnp.float32),
                    jnp.zeros((in_features,), jnp.float32),
                    jnp.ones((in_features,), jnp.float32))
    # Linear(in_features, 10)
    p["w_fc"] = jax.random.normal(ks[10], (in_features, n_classes), jnp.float32) * 0.1
    p["b_fc"] = jax.random.normal(ks[11], (1, n_classes), jnp.float32) * 0.1
    return p


def mobilenet_mnist_forward(x_nchw, params):
    """Forward pass of MobileNetMNIST (eval mode) using one fused Pallas kernel."""
    x = jnp.transpose(x_nchw, (0, 2, 3, 1)).astype(jnp.float32)   # NCHW -> NHWC
    n = x.shape[0]

    # im2col for the 3x3/s2 stem (tiny at MNIST scale).
    # TODO(synk): for large inputs, replace with an in-kernel 9-tap strided-DMA
    # accumulation so the 9x-expanded patches tensor never hits HBM.
    patches, (_, ho, wo) = _im2col(x, ksize=3, stride=2, pad=1)    # (N, HW, 27)
    hw = ho * wo
    k = patches.shape[-1]
    k_pad = ((k + 31) // 32) * 32                                  # 27 -> 32
    patches = jnp.pad(patches, ((0, 0), (0, 0), (0, k_pad - k)))

    # batch blocking: BB images per grid step, batch zero-padded to a multiple
    bb = min(n, BB_MAX)
    n_pad = ((n + bb - 1) // bb) * bb
    if n_pad != n:
        patches = jnp.pad(patches, ((0, n_pad - n), (0, 0), (0, 0)))
    patches_flat = patches.reshape(n_pad * hw, k_pad).astype(jnp.bfloat16)
    pool_mat = _pool_matrix(bb, hw)                                # (bb, bb*hw) f32

    # fold BN scales into the (tiny) weight matrices; pad channels to 128
    s_stem, b_stem = _fold_bn(*params["stem_bn"])
    w_stem = _pad2d(params["w_stem"] * s_stem[None, :], k_pad, C_PAD).astype(jnp.bfloat16)
    b_stem = _pad2d(b_stem[None, :], 1, C_PAD)

    s_pw, b_pw = _fold_bn(*params["pw_bn"])
    w_pw = _pad2d(params["w_pw"] * s_pw[None, :], C_PAD, C_PAD).astype(jnp.bfloat16)
    b_pw = _pad2d(b_pw[None, :], 1, C_PAD)

    # fold BatchNorm1d (eval, running stats) into the final Linear
    s_h, b_h = _fold_bn(*params["head_bn"])
    w_fc = _pad2d(s_h[:, None] * params["w_fc"], C_PAD, C_PAD)
    b_fc = _pad2d(b_h[None, :] @ params["w_fc"] + params["b_fc"], 1, C_PAD)

    n_classes = params["w_fc"].shape[1]
    out = _call_fused(patches_flat, pool_mat, w_stem, b_stem, w_pw, b_pw,
                      w_fc, b_fc, hw=hw, bb=bb, n_pad=n_pad, n_classes=n_classes)
    return out[:n, :n_classes]


# ----------------------------------- main ----------------------------------- #

if __name__ == "__main__":
    key = jax.random.PRNGKey(0)
    k_x, k_p = jax.random.split(key)

    # small image consistent with the module's NCHW conv input
    x = jax.random.normal(k_x, (2, 3, 16, 16), jnp.float32)
    params = init_params(k_p)

    fwd = jax.jit(mobilenet_mnist_forward)
    out = fwd(x, params)
    out = jax.block_until_ready(out)

    assert out.shape == (2, 10)
    # log_softmax rows should (approximately) exponentiate-sum to 1
    assert jnp.allclose(jnp.sum(jnp.exp(out), axis=1), 1.0, atol=1e-3)
    print("KERNEL_OK")
</pallas_src>

<mosaic_0001>
module attributes {stable_mosaic.version = 11 : i64} {
  func.func @fused_forward_kernel(%arg0: i32, %arg1: memref<128x32xbf16, #tpu.memory_space<vmem>>, %arg2: memref<2x128xf32, #tpu.memory_space<vmem>>, %arg3: memref<32x128xbf16, #tpu.memory_space<vmem>>, %arg4: memref<1x128xf32, #tpu.memory_space<vmem>>, %arg5: memref<128x128xbf16, #tpu.memory_space<vmem>>, %arg6: memref<1x128xf32, #tpu.memory_space<vmem>>, %arg7: memref<128x128xf32, #tpu.memory_space<vmem>>, %arg8: memref<1x128xf32, #tpu.memory_space<vmem>>, %arg9: memref<2x128xf32, #tpu.memory_space<vmem>>) attributes {dimension_semantics = [#tpu.dimension_semantics<parallel>], iteration_bounds = array<i64: 1>, scalar_prefetch = 0 : i64, scratch_operands = 0 : i64, tpu.core_type = #tpu.core_type<tc>, window_params = [{transform_indices = @transform_0, window_bounds = array<i64: 128, 32>}, {pipeline_mode = #tpu.pipeline_mode<synchronous>, transform_indices = @transform_1, window_bounds = array<i64: 2, 128>}, {pipeline_mode = #tpu.pipeline_mode<synchronous>, transform_indices = @transform_2, window_bounds = array<i64: 32, 128>}, {pipeline_mode = #tpu.pipeline_mode<synchronous>, transform_indices = @transform_3, window_bounds = array<i64: 1, 128>}, {pipeline_mode = #tpu.pipeline_mode<synchronous>, transform_indices = @transform_4, window_bounds = array<i64: 128, 128>}, {pipeline_mode = #tpu.pipeline_mode<synchronous>, transform_indices = @transform_5, window_bounds = array<i64: 1, 128>}, {pipeline_mode = #tpu.pipeline_mode<synchronous>, transform_indices = @transform_6, window_bounds = array<i64: 128, 128>}, {pipeline_mode = #tpu.pipeline_mode<synchronous>, transform_indices = @transform_7, window_bounds = array<i64: 1, 128>}, {transform_indices = @transform_8, window_bounds = array<i64: 2, 128>}]} {
    %c0 = arith.constant 0 : index
    %c0_0 = arith.constant 0 : index
    %0 = vector.load %arg1[%c0, %c0_0] : memref<128x32xbf16, #tpu.memory_space<vmem>>, vector<128x32xbf16>
    %c0_1 = arith.constant 0 : index
    %c0_2 = arith.constant 0 : index
    %1 = vector.load %arg3[%c0_1, %c0_2] : memref<32x128xbf16, #tpu.memory_space<vmem>>, vector<32x128xbf16>
    %cst = arith.constant dense<0.000000e+00> : vector<128x128xf32>
    %2 = tpu.matmul %0, %1, %cst {dimension_numbers = #tpu.dot_dimension_numbers<[1], [0], [0], [1], [0, 0, 1, 1], [], []>} : vector<128x32xbf16>, vector<32x128xbf16>, vector<128x128xf32> -> vector<128x128xf32>
    %c0_3 = arith.constant 0 : index
    %c0_4 = arith.constant 0 : index
    %3 = vector.load %arg4[%c0_3, %c0_4] : memref<1x128xf32, #tpu.memory_space<vmem>>, vector<1x128xf32>
    %4 = vector.broadcast %3 : vector<1x128xf32> to vector<128x128xf32>
    %5 = arith.addf %2, %4 : vector<128x128xf32>
    %cst_5 = arith.constant 3.000000e+00 : f32
    %6 = vector.broadcast %cst_5 : f32 to vector<128x128xf32>
    %7 = arith.addf %5, %6 : vector<128x128xf32>
    %cst_6 = arith.constant 0.000000e+00 : f32
    %cst_7 = arith.constant 6.000000e+00 : f32
    %8 = vector.broadcast %cst_6 : f32 to vector<128x128xf32>
    %9 = arith.maximumf %8, %7 : vector<128x128xf32>
    %10 = vector.broadcast %cst_7 : f32 to vector<128x128xf32>
    %11 = arith.minimumf %10, %9 : vector<128x128xf32>
    %12 = arith.mulf %5, %11 : vector<128x128xf32>
    %cst_8 = arith.constant 0.166666672 : f32
    %13 = vector.broadcast %cst_8 : f32 to vector<128x128xf32>
    %14 = arith.mulf %12, %13 : vector<128x128xf32>
    %15 = arith.truncf %14 : vector<128x128xf32> to vector<128x128xbf16>
    %c0_9 = arith.constant 0 : index
    %c0_10 = arith.constant 0 : index
    %16 = vector.load %arg5[%c0_9, %c0_10] : memref<128x128xbf16, #tpu.memory_space<vmem>>, vector<128x128xbf16>
    %cst_11 = arith.constant dense<0.000000e+00> : vector<128x128xf32>
    %17 = tpu.matmul %15, %16, %cst_11 {dimension_numbers = #tpu.dot_dimension_numbers<[1], [0], [0], [1], [0, 0, 1, 1], [], []>} : vector<128x128xbf16>, vector<128x128xbf16>, vector<128x128xf32> -> vector<128x128xf32>
    %c0_12 = arith.constant 0 : index
    %c0_13 = arith.constant 0 : index
    %18 = vector.load %arg6[%c0_12, %c0_13] : memref<1x128xf32, #tpu.memory_space<vmem>>, vector<1x128xf32>
    %19 = vector.broadcast %18 : vector<1x128xf32> to vector<128x128xf32>
    %20 = arith.addf %17, %19 : vector<128x128xf32>
    %cst_14 = arith.constant 3.000000e+00 : f32
    %21 = vector.broadcast %cst_14 : f32 to vector<128x128xf32>
    %22 = arith.addf %20, %21 : vector<128x128xf32>
    %cst_15 = arith.constant 0.000000e+00 : f32
    %cst_16 = arith.constant 6.000000e+00 : f32
    %23 = vector.broadcast %cst_15 : f32 to vector<128x128xf32>
    %24 = arith.maximumf %23, %22 : vector<128x128xf32>
    %25 = vector.broadcast %cst_16 : f32 to vector<128x128xf32>
    %26 = arith.minimumf %25, %24 : vector<128x128xf32>
    %27 = arith.mulf %20, %26 : vector<128x128xf32>
    %cst_17 = arith.constant 0.166666672 : f32
    %28 = vector.broadcast %cst_17 : f32 to vector<128x128xf32>
    %29 = arith.mulf %27, %28 : vector<128x128xf32>
    %c0_18 = arith.constant 0 : index
    %c0_19 = arith.constant 0 : index
    %30 = vector.load %arg2[%c0_18, %c0_19] : memref<2x128xf32, #tpu.memory_space<vmem>>, vector<2x128xf32>
    %cst_20 = arith.constant dense<0.000000e+00> : vector<2x128xf32>
    %31 = tpu.matmul %30, %29, %cst_20 {dimension_numbers = #tpu.dot_dimension_numbers<[1], [0], [0], [1], [0, 0, 1, 1], [], []>} : vector<2x128xf32>, vector<128x128xf32>, vector<2x128xf32> -> vector<2x128xf32>
    %c0_21 = arith.constant 0 : index
    %c0_22 = arith.constant 0 : index
    %32 = vector.load %arg7[%c0_21, %c0_22] : memref<128x128xf32, #tpu.memory_space<vmem>>, vector<128x128xf32>
    %cst_23 = arith.constant dense<0.000000e+00> : vector<2x128xf32>
    %33 = tpu.matmul %31, %32, %cst_23 {dimension_numbers = #tpu.dot_dimension_numbers<[1], [0], [0], [1], [0, 0, 1, 1], [], []>} : vector<2x128xf32>, vector<128x128xf32>, vector<2x128xf32> -> vector<2x128xf32>
    %c0_24 = arith.constant 0 : index
    %c0_25 = arith.constant 0 : index
    %34 = vector.load %arg8[%c0_24, %c0_25] : memref<1x128xf32, #tpu.memory_space<vmem>>, vector<1x128xf32>
    %35 = vector.broadcast %34 : vector<1x128xf32> to vector<2x128xf32>
    %36 = arith.addf %33, %35 : vector<2x128xf32>
    %37 = tpu.iota {dimensions = array<i32: 1>} : vector<2x128xi32>
    %c10_i32 = arith.constant 10 : i32
    %38 = vector.broadcast %c10_i32 : i32 to vector<2x128xi32>
    %39 = arith.cmpi slt, %37, %38 : vector<2x128xi32>
    %cst_26 = arith.constant -1.000000e+30 : f32
    %40 = vector.broadcast %cst_26 : f32 to vector<2x128xf32>
    %41 = arith.select %39, %36, %40 : vector<2x128xi1>, vector<2x128xf32>
    %cst_27 = arith.constant dense<0xFF800000> : vector<2xf32>
    %42 = vector.multi_reduction <maximumf>, %41, %cst_27 [1] : vector<2x128xf32> to vector<2xf32>
    %43 = vector.shape_cast %42 : vector<2xf32> to vector<2x1xf32>
    %44 = vector.broadcast %43 : vector<2x1xf32> to vector<2x128xf32>
    %45 = arith.subf %41, %44 : vector<2x128xf32>
    %46 = math.exp %45 : vector<2x128xf32>
    %cst_28 = arith.constant dense<0.000000e+00> : vector<2xf32>
    %47 = vector.multi_reduction <add>, %46, %cst_28 [1] : vector<2x128xf32> to vector<2xf32>
    %48 = vector.shape_cast %47 : vector<2xf32> to vector<2x1xf32>
    %49 = math.log %48 : vector<2x1xf32>
    %50 = vector.broadcast %49 : vector<2x1xf32> to vector<2x128xf32>
    %51 = arith.subf %45, %50 : vector<2x128xf32>
    %c0_29 = arith.constant 0 : index
    %c0_30 = arith.constant 0 : index
    %52 = vector.load %arg9[%c0_29, %c0_30] : memref<2x128xf32, #tpu.memory_space<vmem>>, vector<2x128xf32>
    tpu.vector_store %arg9[%c0_29, %c0_30], %51 {strides = array<i32>} : memref<2x128xf32, #tpu.memory_space<vmem>>, vector<2x128xf32>,
    return
  }
  func.func @transform_0(%arg0: i32) -> (i32, i32) {
    %c0_i32 = arith.constant 0 : i32
    %c0_i32_0 = arith.constant 0 : i32
    return %arg0, %c0_i32 : i32, i32
  }
  func.func @transform_1(%arg0: i32) -> (i32, i32) {
    %c0_i32 = arith.constant 0 : i32
    %c0_i32_0 = arith.constant 0 : i32
    %c0_i32_1 = arith.constant 0 : i32
    return %c0_i32, %c0_i32_0 : i32, i32
  }
  func.func @transform_2(%arg0: i32) -> (i32, i32) {
    %c0_i32 = arith.constant 0 : i32
    %c0_i32_0 = arith.constant 0 : i32
    %c0_i32_1 = arith.constant 0 : i32
    return %c0_i32, %c0_i32_0 : i32, i32
  }
  func.func @transform_3(%arg0: i32) -> (i32, i32) {
    %c0_i32 = arith.constant 0 : i32
    %c0_i32_0 = arith.constant 0 : i32
    %c0_i32_1 = arith.constant 0 : i32
    return %c0_i32, %c0_i32_0 : i32, i32
  }
  func.func @transform_4(%arg0: i32) -> (i32, i32) {
    %c0_i32 = arith.constant 0 : i32
    %c0_i32_0 = arith.constant 0 : i32
    %c0_i32_1 = arith.constant 0 : i32
    return %c0_i32, %c0_i32_0 : i32, i32
  }
  func.func @transform_5(%arg0: i32) -> (i32, i32) {
    %c0_i32 = arith.constant 0 : i32
    %c0_i32_0 = arith.constant 0 : i32
    %c0_i32_1 = arith.constant 0 : i32
    return %c0_i32, %c0_i32_0 : i32, i32
  }
  func.func @transform_6(%arg0: i32) -> (i32, i32) {
    %c0_i32 = arith.constant 0 : i32
    %c0_i32_0 = arith.constant 0 : i32
    %c0_i32_1 = arith.constant 0 : i32
    return %c0_i32, %c0_i32_0 : i32, i32
  }
  func.func @transform_7(%arg0: i32) -> (i32, i32) {
    %c0_i32 = arith.constant 0 : i32
    %c0_i32_0 = arith.constant 0 : i32
    %c0_i32_1 = arith.constant 0 : i32
    return %c0_i32, %c0_i32_0 : i32, i32
  }
  func.func @transform_8(%arg0: i32) -> (i32, i32) {
    %c0_i32 = arith.constant 0 : i32
    %c0_i32_0 = arith.constant 0 : i32
    return %arg0, %c0_i32 : i32, i32
  }
}

</mosaic_0001>

<bundles_post_ra>
// kernel: mobilenet_mnist_forward.1
= control target key start
LH: loop header
LB: loop body
LE: loop exit
PB: predicated region body
PF: predicated region fallthrough
CT: control target
= control target key end

     0   :  { %vm110_vm0 = vcmask 261120   ;;  %s1274_s0 = inlined_call_operand.vmem [shape: bf16[128,32], index: 0, kind: input, shape index: {}]   ;;  %s1275_s1 = inlined_call_operand.vmem [shape: f32[2,128], index: 1, kind: input, shape index: {}]   ;;  %s1276_s2 = inlined_call_operand.vmem [shape: bf16[32,128], index: 2, kind: input, shape index: {}]   ;;  %s1277_s3 = inlined_call_operand.vmem [shape: f32[1,128], index: 3, kind: input, shape index: {}]   ;;  %s1278_s4 = inlined_call_operand.vmem [shape: bf16[128,128], index: 4, kind: input, shape index: {}]   ;;  %s1279_s5 = inlined_call_operand.vmem [shape: f32[1,128], index: 5, kind: input, shape index: {}]   ;;  %s1280_s6 = inlined_call_operand.vmem [shape: f32[128,128], index: 6, kind: input, shape index: {}]   ;;  %s1281_s7 = inlined_call_operand.vmem [shape: f32[1,128], index: 7, kind: input, shape index: {}]   ;;  %s1282_s8 = inlined_call_operand.hbm [shape: f32[2,128], index: 8, kind: output, shape index: {}]  }
   0x1   :  { %v978_v0 = vld [vmem:[%s1276_s2 + $0x8] sm:$0xff]   ;;  %v979_v1 = vld [vmem:[%s1276_s2] sm:$0xff]   ;;  %v982_v4 = vld [vmem:[%s1274_s0 + $0x10] sm:$0xff]  }
   0x2   :  { %853 = vmatprep.subr.bf16.mxu0 %v978_v0  ;;  %v980_v2 = vld [vmem:[%s1274_s0] sm:$0xff]   ;;  %v981_v3 = vld [vmem:[%s1274_s0 + $0x8] sm:$0xff]   ;;  %v988_v5 = vld [vmem:[%s1278_s4 + $0x38] sm:$0xff]  }
   0x3   :  { %854 = vmatpush3.bf16.msra.mxu0 %v978_v0  ;;  %857 = vmatprep.mubr.msk.bf16.mxu0 %vm110_vm0, %v980_v2  ;;  %v989_v6 = vld [vmem:[%s1278_s4 + $0x30] sm:$0xff]   ;;  %v983_v7 = vld [vmem:[%s1274_s0 + $0x18] sm:$0xff]   ;;  %v990_v8 = vld [vmem:[%s1278_s4 + $0x28] sm:$0xff]  }
   0x4   :  { %855 = vmatprep.subr.bf16.mxu0 %v979_v1  ;;  %873 = vmatprep.subr.bf16.mxu1 %v988_v5  ;;  %v984_v9 = vld [vmem:[%s1274_s0 + $0x20] sm:$0xff]  }
   0x5   :  { %874 = vmatpush3.bf16.msra.mxu1 %v988_v5 }
   0x6   :  { %875 = vmatprep.subr.bf16.mxu1 %v989_v6 }
   0x7   :  { %856 = vmatpush3.bf16.msra.mxu0 %v979_v1 }
   0xa   :  { %858 = vmatmul.mubr.msk.bf16.vlgmr.msra.gmra.mxu0 %vm110_vm0, %v981_v3 }
   0xb   :  { %861 = vmatprep.mubr.msk.bf16.mxu0 %vm110_vm0, %v982_v4 }
   0xc   :  { %13 = vsyncpa [#allocation3], 0  ;;  %876 = vmatpush3.bf16.msra.mxu1 %v989_v6  ;;  %v985_v10 = vld [vmem:[%s1274_s0 + $0x28] sm:$0xff]   ;;  %v986_v11 = vld [vmem:[%s1274_s0 + $0x30] sm:$0xff]   ;;  %vm1023_vm1 = vmmov 0   ;;  %vm736_vm3 = vcmask 1041408  }
   0xd   :  { %877 = vmatprep.subr.bf16.mxu1 %v990_v8  ;;  %v987_v12 = vld [vmem:[%s1274_s0 + $0x38] sm:$0xff]   ;;  %v991_v13 = vld [vmem:[%s1278_s4 + $0x20] sm:$0xff]   ;;  %v993_v15 = vld [vmem:[%s1278_s4 + $0x10] sm:$0xff]  }
   0xe   :  { %v992_v14 = vld [vmem:[%s1278_s4 + $0x18] sm:$0xff]   ;;  %v994_v16 = vld [vmem:[%s1278_s4 + $0x8] sm:$0xff]   ;;  %v995_v17 = vld [vmem:[%s1278_s4] sm:$0xff]  }
   0xf   :  { %v1135_v18 = vld [vmem:[%s1277_s3] ss:$0 sm:$0xff] }
  0x10   :  { %878 = vmatpush3.bf16.msra.mxu1 %v990_v8 }
  0x11   :  { %879 = vmatprep.subr.bf16.mxu1 %v991_v13 }
  0x12   :  { %862 = vmatmul.mubr.msk.bf16.gmra.mxu0 %vm110_vm0, %v983_v7 }
  0x13   :  { %865 = vmatprep.mubr.msk.bf16.mxu0 %vm110_vm0, %v984_v9 }
  0x14   :  { %880 = vmatpush3.bf16.msra.mxu1 %v991_v13 }
  0x15   :  { %881 = vmatprep.subr.bf16.mxu1 %v992_v14 }
  0x18   :  { %882 = vmatpush3.bf16.msra.mxu1 %v992_v14 }
  0x19   :  { %883 = vmatprep.subr.bf16.mxu1 %v993_v15 }
  0x1a   :  { %866 = vmatmul.mubr.msk.bf16.gmra.mxu0 %vm110_vm0, %v985_v10 }
  0x1b   :  { %869 = vmatprep.mubr.msk.bf16.mxu0 %vm110_vm0, %v986_v11 }
  0x1c   :  { %884 = vmatpush3.bf16.msra.mxu1 %v993_v15 }
  0x1d   :  { %885 = vmatprep.subr.bf16.mxu1 %v994_v16 }
  0x20   :  { %886 = vmatpush3.bf16.msra.mxu1 %v994_v16 }
  0x21   :  { %887 = vmatprep.subr.bf16.mxu1 %v995_v17 }
  0x22   :  { %870 = vmatmul.mubr.msk.bf16.gmra.mxu0 %vm110_vm0, %v987_v12 }
  0x24   :  { %888 = vmatpush3.bf16.msra.mxu1 %v995_v17 }
  0xca   :  { %v859_v19 = vpop.f32.mrf.mxu0 }
  0xcb   :  { %v178_v20 = vadd.f32 %v859_v19, %v1135_v18 }
  0xcc   :  { %v169_v21 = vpop.f32.mrf.mxu0 }
  0xcd   :  { %v234_v22 = vadd.f32 3.0, %v178_v20  ;;  %v170_v23 = vadd.f32 %v1135_v18, %v169_v21 }
  0xce   :  { %v860_v24 = vpop.f32.mrf.mxu0 }
  0xcf   :  { %v250_v25 = vmax.f32 %v234_v22, 0.0  ;;  %v232_v26 = vadd.f32 3.0, %v170_v23  ;;  %v181_v27 = vadd.f32 %v860_v24, %v1135_v18 }
  0xd0   :  { %v172_v28 = vpop.f32.mrf.mxu0 }
  0xd1   :  { %v248_v29 = vmax.f32 %v232_v26, 0.0  ;;  %v235_v30 = vadd.f32 3.0, %v181_v27  ;;  %v173_v31 = vadd.f32 %v1135_v18, %v172_v28  ;;  %v266_v32 = vmin.f32 %v250_v25, 6.0 }
  0xd2   :  { %v863_v33 = vpop.f32.mrf.mxu0 }
  0xd3   :  { %v251_v34 = vmax.f32 %v235_v30, 0.0  ;;  %v233_v35 = vadd.f32 3.0, %v173_v31  ;;  %v264_v36 = vmin.f32 %v248_v29, 6.0  ;;  %v194_v37 = vadd.f32 %v863_v33, %v1135_v18 }
  0xd4   :  { %v185_v38 = vpop.f32.mrf.mxu0  ;;  %v282_v42 = vmul.f32 %v266_v32, %v178_v20 }
  0xd5   :  { %v267_v39 = vmin.f32 %v251_v34, 6.0  ;;  %v249_v40 = vmax.f32 %v233_v35, 0.0  ;;  %v186_v41 = vadd.f32 %v1135_v18, %v185_v38  ;;  %v238_v43 = vadd.f32 3.0, %v194_v37 }
  0xd6   :  { %v864_v44 = vpop.f32.mrf.mxu0  ;;  %v280_v50 = vmul.f32 %v264_v36, %v170_v23  ;;  %v298_v55 = vmul.f32 0.16666667, %v282_v42 }
  0xd7   :  { %v283_v45 = vmul.f32 %v267_v39, %v181_v27  ;;  %v265_v46 = vmin.f32 %v249_v40, 6.0  ;;  %v236_v47 = vadd.f32 3.0, %v186_v41  ;;  %v197_v48 = vadd.f32 %v864_v44, %v1135_v18 }
  0xd8   :  { %v188_v49 = vpop.f32.mrf.mxu0  ;;  %v254_v51 = vmax.f32 %v238_v43, 0.0  ;;  %v296_v0 = vmul.f32 0.16666667, %v280_v50 }
  0xd9   :  { %v252_v52 = vmax.f32 %v236_v47, 0.0  ;;  %v239_v53 = vadd.f32 3.0, %v197_v48  ;;  %v189_v54 = vadd.f32 %v1135_v18, %v188_v49  ;;  %v281_v57 = vmul.f32 %v265_v46, %v173_v31 }
  0xda   :  { %v867_v56 = vpop.f32.mrf.mxu0  ;;  %v299_v58 = vmul.f32 0.16666667, %v283_v45  ;;  %v270_v2 = vmin.f32 %v254_v51, 6.0 }
  0xdb   :  { %v255_v59 = vmax.f32 %v239_v53, 0.0  ;;  %v237_v60 = vadd.f32 3.0, %v189_v54  ;;  %v210_v61 = vadd.f32 %v867_v56, %v1135_v18  ;;  %v268_v62 = vmin.f32 %v252_v52, 6.0 }
  0xdc   :  { %v201_v63 = vpop.f32.mrf.mxu0  ;;  %v297_v1 = vmul.f32 0.16666667, %v281_v57  ;;  %v313_v11 = vpack.c.bf16 %v299_v58, %v298_v55  ;;  %v286_v17 = vmul.f32 %v270_v2, %v194_v37 }
  0xdd   :  { %v271_v3 = vmin.f32 %v255_v59, 6.0  ;;  %v253_v4 = vmax.f32 %v237_v60, 0.0  ;;  %v242_v5 = vadd.f32 3.0, %v210_v61  ;;  %v202_v6 = vadd.f32 %v1135_v18, %v201_v63 }
  0xde   :  { %v868_v7 = vpop.f32.mrf.mxu0  ;;  %v312_v8 = vpack.c.bf16 %v297_v1, %v296_v0  ;;  %v284_v12 = vmul.f32 %v268_v62, %v186_v41  ;;  %v302_v33 = vmul.f32 0.16666667, %v286_v17  ;;  %v649_v17 = vld [vmem:[%s1280_s6 + $0x50] sm:$0xff] }
  0xdf   :  { %v287_v9 = vmul.f32 %v271_v3, %v197_v48  ;;  %v269_v10 = vmin.f32 %v253_v4, 6.0  ;;  %v258_v13 = vmax.f32 %v242_v5, 0.0  ;;  %v240_v14 = vadd.f32 3.0, %v202_v6 }
  0xe0   :  { %v213_v15 = vadd.f32 %v868_v7, %v1135_v18  ;;  %889 = vmatprep.mubr.bf16.mxu1 %v312_v8  ;;  %v204_v16 = vpop.f32.mrf.mxu0  ;;  %v300_v28 = vmul.f32 0.16666667, %v284_v12  ;;  %v654_v12 = vld [vmem:[%s1280_s6 + $0x78] sm:$0xff] }
  0xe1   :  { %v285_v19 = vmul.f32 %v269_v10, %v189_v54  ;;  %v205_v20 = vadd.f32 %v1135_v18, %v204_v16  ;;  %890 = vmatmul.mubr.bf16.vlgmr.msra.gmra.mxu1 %v313_v11  ;;  %v256_v21 = vmax.f32 %v240_v14, 0.0  ;;  %v303_v24 = vmul.f32 0.16666667, %v287_v9  ;;  %v652_v14 = vld [vmem:[%s1280_s6 + $0x68] sm:$0xff]  ;;  %v650_v16 = vld [vmem:[%s1280_s6 + $0x58] sm:$0xff] }
  0xe2   :  { %v243_v22 = vadd.f32 3.0, %v213_v15  ;;  %v871_v23 = vpop.f32.mrf.mxu0  ;;  %v274_v29 = vmin.f32 %v258_v13, 6.0  ;;  %v1022_v11 = vmov 0.0   ;;  %v653_v13 = vld [vmem:[%s1280_s6 + $0x70] sm:$0xff] }
  0xe3   :  { %v301_v25 = vmul.f32 0.16666667, %v285_v19  ;;  %v241_v26 = vadd.f32 3.0, %v205_v20  ;;  %v226_v27 = vadd.f32 %v871_v23, %v1135_v18  ;;  %v272_v30 = vmin.f32 %v256_v21, 6.0  ;;  %905 = vmatprep.subr.mxu0 %v1022_v11  ;;  %940 = vmatprep.subr.mxu1 %v1022_v11  ;;  %v648_v19 = vld [vmem:[%s1280_s6 + $0x48] sm:$0xff]  ;;  %v646_v21 = vld [vmem:[%s1280_s6 + $0x38] sm:$0xff] }
  0xe4   :  { %v259_v31 = vmax.f32 %v243_v22, 0.0  ;;  %v217_v32 = vpop.f32.mrf.mxu0  ;;  %v315_v44 = vpack.c.bf16 %v303_v24, %v302_v33  ;;  %v290_v45 = vmul.f32 %v274_v29, %v210_v61  ;;  %937 = vmatprep.mubr.msk.f32.mxu0 %vm1023_vm1, %v1022_v11  ;;  %941 = vmatpush3.msra.mxu1 %v654_v12  ;;  %v645_v22 = vld [vmem:[%s1280_s6 + $0x30] sm:$0xff]  ;;  %v644_v23 = vld [vmem:[%s1280_s6 + $0x28] sm:$0xff]  ;;  %v643_v24 = vld [vmem:[%s1280_s6 + $0x20] sm:$0xff] }
  0xe5   :  { %v257_v34 = vmax.f32 %v241_v26, 0.0  ;;  %v246_v35 = vadd.f32 3.0, %v226_v27  ;;  %v218_v36 = vadd.f32 %v1135_v18, %v217_v32  ;;  %v288_v37 = vmul.f32 %v272_v30, %v202_v6  ;;  %942 = vmatprep.subr.mxu1 %v1022_v11  ;;  %v641_v26 = vld [vmem:[%s1280_s6 + $0x10] sm:$0xff] }
  0xe6   :  { %v275_v38 = vmin.f32 %v259_v31, 6.0  ;;  %v872_v39 = vpop.f32.mrf.mxu0  ;;  %v314_v40 = vpack.c.bf16 %v301_v25, %v300_v28  ;;  %v306_v59 = vmul.f32 0.16666667, %v290_v45  ;;  %943 = vmatpush3.msra.mxu1 %v653_v13  ;;  %v642_v25 = vld [vmem:[%s1280_s6 + $0x18] sm:$0xff] }
  0xe7   :  { %v273_v41 = vmin.f32 %v257_v34, 6.0  ;;  %v244_v42 = vadd.f32 3.0, %v218_v36  ;;  %v229_v43 = vadd.f32 %v872_v39, %v1135_v18  ;;  %v262_v49 = vmax.f32 %v246_v35, 0.0  ;;  %944 = vmatprep.subr.mxu1 %v1022_v11 }
  0xe8   :  { %v291_v46 = vmul.f32 %v275_v38, %v213_v15  ;;  %893 = vmatprep.mubr.bf16.mxu1 %v314_v40  ;;  %v220_v47 = vpop.f32.mrf.mxu0  ;;  %v304_v52 = vmul.f32 0.16666667, %v288_v37  ;;  %v651_v15 = vld [vmem:[%s1280_s6 + $0x60] sm:$0xff]  ;;  %945 = vmatpush3.msra.mxu1 %v652_v14 }
  0xe9   :  { %v289_v48 = vmul.f32 %v273_v41, %v205_v20  ;;  %v260_v50 = vmax.f32 %v244_v42, 0.0  ;;  %v247_v51 = vadd.f32 3.0, %v229_v43  ;;  %894 = vmatmul.mubr.bf16.gmra.mxu1 %v315_v44  ;;  %v221_v53 = vadd.f32 %v1135_v18, %v220_v47  ;;  %946 = vmatprep.subr.mxu1 %v1022_v11  ;;  %v647_v20 = vld [vmem:[%s1280_s6 + $0x40] sm:$0xff] }
  0xea   :  { %v307_v54 = vmul.f32 0.16666667, %v291_v46  ;;  %v278_v60 = vmin.f32 %v262_v49, 6.0  ;;  %947 = vmatpush3.msra.mxu1 %v651_v15  ;;  %v1226_v40 = vld [vmem:[%s1279_s5] ss:$0 sm:$0xff] }
  0xeb   :  { %v305_v55 = vmul.f32 0.16666667, %v289_v48  ;;  %v263_v56 = vmax.f32 %v247_v51, 0.0  ;;  %v276_v57 = vmin.f32 %v260_v50, 6.0  ;;  %v245_v58 = vadd.f32 3.0, %v221_v53  ;;  %948 = vmatprep.subr.mxu1 %v1022_v11 }
  0xec   :  { %v317_v1 = vpack.c.bf16 %v307_v54, %v306_v59  ;;  %v294_v4 = vmul.f32 %v278_v60, %v226_v27  ;;  %949 = vmatpush3.msra.mxu1 %v650_v16  ;;  %v640_v27 = vld [vmem:[%s1280_s6 + $0x8] sm:$0xff] }
  0xed   :  { %v279_v62 = vmin.f32 %v263_v56, 6.0  ;;  %v316_v61 = vpack.c.bf16 %v305_v55, %v304_v52  ;;  %v261_v63 = vmax.f32 %v245_v58, 0.0  ;;  %v292_v2 = vmul.f32 %v276_v57, %v218_v36  ;;  %950 = vmatprep.subr.mxu1 %v1022_v11 }
  0xee   :  { %v310_v8 = vmul.f32 0.16666667, %v294_v4  ;;  %951 = vmatpush3.msra.mxu1 %v649_v17 }
  0xef   :  { %v295_v0 = vmul.f32 %v279_v62, %v229_v43  ;;  %897 = vmatprep.mubr.bf16.mxu1 %v316_v61  ;;  %v277_v3 = vmin.f32 %v261_v63, 6.0  ;;  %v308_v18 = vmul.f32 0.16666667, %v292_v2  ;;  %952 = vmatprep.subr.mxu1 %v1022_v11 }
  0xf0   :  { %953 = vmatpush3.msra.mxu1 %v648_v19 }
  0xf1   :  { %898 = vmatmul.mubr.bf16.gmra.mxu1 %v317_v1  ;;  %v293_v5 = vmul.f32 %v277_v3, %v221_v53  ;;  %v311_v6 = vmul.f32 0.16666667, %v295_v0  ;;  %954 = vmatprep.subr.mxu1 %v1022_v11 }
  0xf2   :  { %955 = vmatpush3.msra.mxu1 %v647_v20 }
  0xf3   :  { %v309_v7 = vmul.f32 0.16666667, %v293_v5  ;;  %v319_v10 = vpack.c.bf16 %v311_v6, %v310_v8  ;;  %956 = vmatprep.subr.mxu1 %v1022_v11 }
  0xf4   :  { %957 = vmatpush3.msra.mxu1 %v646_v21 }
  0xf5   :  { %v318_v9 = vpack.c.bf16 %v309_v7, %v308_v18  ;;  %958 = vmatprep.subr.mxu1 %v1022_v11 }
  0xf6   :  { %959 = vmatpush3.msra.mxu1 %v645_v22 }
  0xf7   :  { %901 = vmatprep.mubr.bf16.mxu1 %v318_v9  ;;  %960 = vmatprep.subr.mxu1 %v1022_v11 }
  0xf8   :  { %961 = vmatpush3.msra.mxu1 %v644_v23 }
  0xf9   :  { %902 = vmatmul.mubr.bf16.gmra.mxu1 %v319_v10  ;;  %962 = vmatprep.subr.mxu1 %v1022_v11 }
  0xfa   :  { %972 = vmatprep.mubr.msk.f32.mxu1 %vm1023_vm1, %v1022_v11  ;;  %963 = vmatpush3.msra.mxu1 %v643_v24 }
  0xfb   :  { %964 = vmatprep.subr.mxu1 %v1022_v11 }
  0xfc   :  { %965 = vmatpush3.msra.mxu1 %v642_v25 }
  0xfd   :  { %966 = vmatprep.subr.mxu1 %v1022_v11 }
  0xfe   :  { %967 = vmatpush3.msra.mxu1 %v641_v26 }
  0xff   :  { %968 = vmatprep.subr.mxu1 %v1022_v11 }
 0x100   :  { %969 = vmatpush3.msra.mxu1 %v640_v27 }
 0x101   :  { %970 = vmatprep.subr.mxu1 %v1022_v11 }
 0x1a1   :  { %v1217_v28 = vpop.f32.mrf.mxu1 }
 0x1a3   :  { %v1219_v29 = vpop.f32.mrf.mxu1 }
 0x1a5   :  { %v892_v30 = vpop.f32.mrf.mxu1 }
 0x1a6   :  { %v437_v24 = vadd.f32 %v892_v30, %v1226_v40 }
 0x1a7   :  { %v1221_v31 = vpop.f32.mrf.mxu1 }
 0x1a8   :  { %v491_v30 = vadd.f32 3.0, %v437_v24 }
 0x1a9   :  { %v895_v32 = vpop.f32.mrf.mxu1 }
 0x1aa   :  { %v450_v4 = vadd.f32 %v895_v32, %v1226_v40 }
 0x1ab   :  { %v441_v33 = vpop.f32.mrf.mxu1 }
 0x1ac   :  { %v494_v17 = vadd.f32 3.0, %v450_v4  ;;  %v442_v19 = vadd.f32 %v1226_v40, %v441_v33 }
 0x1ad   :  { %v896_v34 = vpop.f32.mrf.mxu1 }
 0x1ae   :  { %v453_v63 = vadd.f32 %v896_v34, %v1226_v40  ;;  %v492_v33 = vadd.f32 3.0, %v442_v19 }
 0x1af   :  { %v444_v35 = vpop.f32.mrf.mxu1 }
 0x1b0   :  { %v495_v10 = vadd.f32 3.0, %v453_v63  ;;  %v445_v12 = vadd.f32 %v1226_v40, %v444_v35  ;;  %v434_v35 = vadd.f32 %v1217_v28, %v1226_v40 }
 0x1b1   :  { %v899_v36 = vpop.f32.mrf.mxu1 }
 0x1b2   :  { %v466_v47 = vadd.f32 %v899_v36, %v1226_v40  ;;  %v511_v25 = vmax.f32 %v495_v10, 0.0  ;;  %v493_v26 = vadd.f32 3.0, %v445_v12  ;;  %v510_v36 = vmax.f32 %v494_v17, 0.0 }
 0x1b3   :  { %v457_v37 = vpop.f32.mrf.mxu1  ;;  %v490_v28 = vadd.f32 3.0, %v434_v35 }
 0x1b4   :  { %v498_v57 = vadd.f32 3.0, %v466_v47  ;;  %v458_v58 = vadd.f32 %v1226_v40, %v457_v37 }
 0x1b5   :  { %v900_v38 = vpop.f32.mrf.mxu1 }
 0x1b6   :  { %v469_v44 = vadd.f32 %v900_v38, %v1226_v40  ;;  %v514_v5 = vmax.f32 %v498_v57, 0.0  ;;  %v496_v6 = vadd.f32 3.0, %v458_v58 }
 0x1b7   :  { %v460_v39 = vpop.f32.mrf.mxu1 }
 0x1b8   :  { %v499_v53 = vadd.f32 3.0, %v469_v44  ;;  %v461_v54 = vadd.f32 %v1226_v40, %v460_v39  ;;  %v530_v20 = vmin.f32 %v514_v5, 6.0  ;;  %v512_v21 = vmax.f32 %v496_v6, 0.0 }
 0x1b9   :  { %v903_v41 = vpop.f32.mrf.mxu1 }
 0x1ba   :  { %v482_v42 = vadd.f32 %v903_v41, %v1226_v40  ;;  %v515_v0 = vmax.f32 %v499_v53, 0.0  ;;  %v497_v1 = vadd.f32 3.0, %v461_v54  ;;  %v546_v37 = vmul.f32 %v530_v20, %v466_v47 }
 0x1bb   :  { %v473_v43 = vpop.f32.mrf.mxu1  ;;  %v528_v38 = vmin.f32 %v512_v21, 6.0  ;;  %v429_v41 = vadd.f32 %v1226_v40, %v1221_v31  ;;  %v526_v47 = vmin.f32 %v510_v36, 6.0  ;;  %v792_v21 = vld [vmem:[%s1281_s7] ss:$0 sm:$0xff] }
 0x1bc   :  { %v502_v45 = vadd.f32 3.0, %v482_v42  ;;  %v474_v46 = vadd.f32 %v1226_v40, %v473_v43  ;;  %v531_v13 = vmin.f32 %v515_v0, 6.0  ;;  %v513_v14 = vmax.f32 %v497_v1, 0.0 }
 0x1bd   :  { %v904_v48 = vpop.f32.mrf.mxu1  ;;  %v509_v43 = vmax.f32 %v493_v26, 0.0  ;;  %v489_v31 = vadd.f32 3.0, %v429_v41 }
 0x1be   :  { %v518_v49 = vmax.f32 %v502_v45, 0.0  ;;  %v500_v50 = vadd.f32 3.0, %v474_v46  ;;  %v485_v51 = vadd.f32 %v904_v48, %v1226_v40  ;;  %v547_v27 = vmul.f32 %v531_v13, %v469_v44 }
 0x1bf   :  { %v476_v52 = vpop.f32.mrf.mxu1  ;;  %v529_v32 = vmin.f32 %v513_v14, 6.0  ;;  %v508_v48 = vmax.f32 %v492_v33, 0.0  ;;  %v525_v53 = vmin.f32 %v509_v43, 6.0  ;;  %v568_v14 = vld [vmem:[%s1275_s1] sm:$0x3]  ;;  %s1024_s1 = smov [#allocation2]  }
 0x1c0   :  { %v503_v55 = vadd.f32 3.0, %v485_v51  ;;  %v477_v56 = vadd.f32 %v1226_v40, %v476_v52  ;;  %v534_v59 = vmin.f32 %v518_v49, 6.0  ;;  %v516_v60 = vmax.f32 %v500_v50, 0.0 }
 0x1c1   :  { %v563_v44 = vmul.f32 0.16666667, %v547_v27  ;;  %v545_v45 = vmul.f32 %v529_v32, %v461_v54  ;;  %v562_v49 = vmul.f32 0.16666667, %v546_v37  ;;  %v544_v50 = vmul.f32 %v528_v38, %v458_v58 }
 0x1c2   :  { %v519_v62 = vmax.f32 %v503_v55, 0.0  ;;  %v501_v61 = vadd.f32 3.0, %v477_v56  ;;  %v550_v18 = vmul.f32 %v534_v59, %v482_v42  ;;  %v532_v7 = vmin.f32 %v516_v60, 6.0 }
 0x1c3   :  { %v527_v42 = vmin.f32 %v511_v25, 6.0  ;;  %v561_v55 = vmul.f32 0.16666667, %v545_v45  ;;  %v506_v54 = vmax.f32 %v490_v28, 0.0  ;;  %v560_v57 = vmul.f32 0.16666667, %v544_v50 }
 0x1c4   :  { %v535_v2 = vmin.f32 %v519_v62, 6.0  ;;  %v517_v3 = vmax.f32 %v501_v61, 0.0  ;;  %v566_v22 = vmul.f32 0.16666667, %v550_v18  ;;  %v548_v23 = vmul.f32 %v532_v7, %v474_v46 }
 0x1c5   :  { %v426_v46 = vadd.f32 %v1226_v40, %v1219_v29  ;;  %v543_v52 = vmul.f32 %v527_v42, %v453_v63  ;;  %v542_v29 = vmul.f32 %v526_v47, %v450_v4  ;;  %v524_v40 = vmin.f32 %v508_v48, 6.0 }
 0x1c6   :  { %v551_v8 = vmul.f32 %v535_v2, %v485_v51  ;;  %v533_v9 = vmin.f32 %v517_v3, 6.0  ;;  %v564_v39 = vmul.f32 0.16666667, %v548_v23  ;;  %v507_v51 = vmax.f32 %v491_v30, 0.0 }
 0x1c7   :  { %v505_v59 = vmax.f32 %v489_v31, 0.0  ;;  %v559_v60 = vmul.f32 0.16666667, %v543_v52  ;;  %v541_v62 = vmul.f32 %v525_v53, %v445_v12  ;;  %v522_v61 = vmin.f32 %v506_v54, 6.0 }
 0x1c8   :  { %v567_v15 = vmul.f32 0.16666667, %v551_v8  ;;  %v549_v16 = vmul.f32 %v533_v9, %v477_v56  ;;  %v488_v56 = vadd.f32 3.0, %v426_v46  ;;  %v523_v58 = vmin.f32 %v507_v51, 6.0 }
 0x1c9   :  { %v558_v0 = vmul.f32 0.16666667, %v542_v29  ;;  %v540_v1 = vmul.f32 %v524_v40, %v442_v19  ;;  %v521_v3 = vmin.f32 %v505_v59, 6.0  ;;  %v557_v4 = vmul.f32 0.16666667, %v541_v62 }
 0x1ca   :  { %906 = vmatpush3.msra.mxu0 %v567_v15  ;;  %v565_v34 = vmul.f32 0.16666667, %v549_v16  ;;  %v504_v63 = vmax.f32 %v488_v56, 0.0  ;;  %v539_v2 = vmul.f32 %v523_v58, %v437_v24  ;;  %v538_v5 = vmul.f32 %v522_v61, %v434_v35  ;;  %v639_v15 = vld [vmem:[%s1280_s6] sm:$0xff]  ;;  %s756_s6 = sshll.u32 %s1024_s1, 4  ;;  %s757_s6 = int_to_ptr.vmem [resolvable:$true] %s756_s6 }
 0x1cb   :  { %907 = vmatprep.subr.mxu0 %v1022_v11  ;;  %v556_v18 = vmul.f32 0.16666667, %v540_v1  ;;  %v537_v8 = vmul.f32 %v521_v3, %v429_v41  ;;  %971 = vmatpush3.msra.mxu1 %v639_v15  ;;  %v732_v19 = vlaneseq  ;;  %s1000_s7 = scalar_lea.vmem %s757_s6, 32  ;;  %p1005_p1 = scmp.lt.s32.totalorder %s757_s6, %s757_s6 }
 0x1cc   :  { %908 = vmatpush3.msra.mxu0 %v566_v22  ;;  %v520_v6 = vmin.f32 %v504_v63, 6.0  ;;  %v555_v7 = vmul.f32 0.16666667, %v539_v2  ;;  %v554_v9 = vmul.f32 0.16666667, %v538_v5  ;;  %p1001_p0 = scmp.ne.s32.totalorder %s757_s6, %s1000_s7  ;;  %p1006_p2 = scmp.lt.s32.totalorder %s1000_s7, %s1000_s7 }
 0x1cd   :  { %909 = vmatprep.subr.mxu0 %v1022_v11  ;;  %v553_v12 = vmul.f32 0.16666667, %v537_v8  ;;  %v733_v20 = vand.u32 127, %v732_v19 }
 0x1ce   :  { %910 = vmatpush3.msra.mxu0 %v565_v34  ;;  %v536_v10 = vmul.f32 %v520_v6, %v426_v46  ;;  %p1007_p3 = por %p1006_p2, %p1005_p1 }
 0x1cf   :  { %911 = vmatprep.subr.mxu0 %v1022_v11  ;;  %vm734_vm2 = vcmp.lt.s32.totalorder %v733_v20, 10 }
 0x1d0   :  { %912 = vmatpush3.msra.mxu0 %v564_v39  ;;  %v552_v13 = vmul.f32 0.16666667, %v536_v10  ;;  %p1008_p4 = pnand %p1007_p3, %p1001_p0 }
 0x1d1   :  { %913 = vmatprep.subr.mxu0 %v1022_v11 }
 0x1d2   :  { %914 = vmatpush3.msra.mxu0 %v563_v44 }
 0x1d3   :  { %915 = vmatprep.subr.mxu0 %v1022_v11 }
 0x1d4   :  { %916 = vmatpush3.msra.mxu0 %v562_v49 }
 0x1d5   :  { %917 = vmatprep.subr.mxu0 %v1022_v11 }
 0x1d6   :  { %918 = vmatpush3.msra.mxu0 %v561_v55 }
 0x1d7   :  { %919 = vmatprep.subr.mxu0 %v1022_v11 }
 0x1d8   :  { %920 = vmatpush3.msra.mxu0 %v560_v57 }
 0x1d9   :  { %921 = vmatprep.subr.mxu0 %v1022_v11 }
 0x1da   :  { %922 = vmatpush3.msra.mxu0 %v559_v60 }
 0x1db   :  { %923 = vmatprep.subr.mxu0 %v1022_v11 }
 0x1dc   :  { %924 = vmatpush3.msra.mxu0 %v558_v0 }
 0x1dd   :  { %925 = vmatprep.subr.mxu0 %v1022_v11 }
 0x1de   :  { %926 = vmatpush3.msra.mxu0 %v557_v4 }
 0x1df   :  { %927 = vmatprep.subr.mxu0 %v1022_v11 }
 0x1e0   :  { %928 = vmatpush3.msra.mxu0 %v556_v18 }
 0x1e1   :  { %929 = vmatprep.subr.mxu0 %v1022_v11 }
 0x1e2   :  { %930 = vmatpush3.msra.mxu0 %v555_v7 }
 0x1e3   :  { %931 = vmatprep.subr.mxu0 %v1022_v11 }
 0x1e4   :  { %932 = vmatpush3.msra.mxu0 %v554_v9 }
 0x1e5   :  { %933 = vmatprep.subr.mxu0 %v1022_v11 }
 0x1e6   :  { %934 = vmatpush3.msra.mxu0 %v553_v12 }
 0x1e7   :  { %935 = vmatprep.subr.mxu0 %v1022_v11 }
 0x1e8   :  { %936 = vmatpush3.msra.mxu0 %v552_v13 }
 0x1e9   :  { %938 = vmatmul.mubr.f32.vlgmr.msra.gmra.mxu0 %v568_v14 }
 0x2a9   :  { %v635_v16 = vpop.f32.mrf.mxu0 }
 0x2aa   :  { %973 = vmatmul.mubr.f32.vlgmr.msra.gmra.mxu1 %v635_v16 }
 0x2ab   :  { %v939_v17 = vpop.f32.mrf.mxu0 }
 0x36a   :  { %v728_v22 = vpop.f32.mrf.mxu1 }
 0x36b   :  { %v729_v23 = vadd.f32 %v792_v21, %v728_v22 }
 0x36c   :  { %v974_v11 = vpop.f32.mrf.mxu1 }
 0x36d   :  { %v735_v24 = vsel %vm734_vm2, %v729_v23, -1e+30 }
 0x36e   :  { %v737_v25 = vsel %vm736_vm3, %v735_v24, -inf }
 0x36f   :  { %738 = vmax.xlane.f32.xlu0 %v737_v25 }
 0x3f8   :  { %v739_v26 = vpop.xlane.xlu0 %738 }
 0x3f9   :  { %v740_v27 = vsub.f32 %v735_v24, %v739_v26 }
 0x3fb   :  { %v741_v32 = vmul.f32 1.442695, %v740_v27 }
 0x3fd   :  { %996 = vpow2.f32 %v741_v32 }
 0x40a   :  { %v997_v34 = vpop.eup %996 }
 0x40b   :  { %v743_v35 = vsel %vm736_vm3, %v997_v34, 0.0 }
 0x40c   :  { %744 = vadd.xlane.f32.xlu0 %v743_v35 }
 0x495   :  { %v745_v36 = vpop.xlane.xlu0 %744 }
 0x496   :  { %998 = vlog2.f32 %v745_v36 }
 0x4a3   :  { %v999_v33 = vpop.eup %998 }
 0x4a4   :  { %v747_v37 = vmul.f32 0.6931472, %v999_v33 }
 0x4a6   :  { %v748_v38 = vsub.f32 %v740_v27, %v747_v37 }
 0x4a8   :  { %749 = vst [vmem:[#allocation2] sm:$0x3] %v748_v38 }
 0x4a9   :  { %1011 = shalt.err (!%p1008_p4)
}
 0x4aa   :  { %759 = dma.vmem_to_hbm [thread:$0]  %s757_s6, 32, %s1282_s8, [#allocation3]  }
 0x4ab   :  { %1020 = dma.done.wait [#allocation3], 32  }
 0x4ac   :  { %1021 = vsyncadd [#allocation3], 4294967264 }
 0x4ad   :  { %763 = vsyncpa [#allocation3], 1 }

</bundles_post_ra>
